<compile_context>
chip_gen: v5e
topology: v5e:2x2
jax: 0.10.0
libtpu: 0.0.40
codegen_flags: <defaults>
</compile_context>

<pallas_src>
import math
from functools import partial

import jax
import jax.numpy as jnp
from jax.experimental import pallas as pl
from jax.experimental.pallas import tpu as pltpu


# ------------------------------ Pallas kernel -------------------------------

def _mca_gate_kernel(coef_ref, tap_ref, x_ref, o_ref, *, k, pad):
    # coef_ref : SMEM (2,) f32 -> (0.5 + sigmoid(w0), 0.5 + sigmoid(w1))
    # tap_ref  : SMEM (k,) f32 -> taps of the Conv2d(1,1,(1,k)) filter
    # x_ref    : VMEM (Bt, C, HW)   spatial on lanes, channels on sublanes
    # o_ref    : VMEM (Bt, C, HW)
    x = x_ref[...].astype(jnp.float32)
    bt, c, n = x.shape

    # ---- single-pass per-channel mean / unbiased std ------------------------
    s = jnp.sum(x, axis=2)                                  # (Bt, C)
    ss = jnp.sum(x * x, axis=2)                             # (Bt, C)
    mean = s * (1.0 / n)
    inv_nm1 = 1.0 / max(n - 1, 1)        # guard HW==1 (torch would give NaN)
    var = jnp.maximum(ss - s * mean, 0.0) * inv_nm1         # clamp f32 cancellation
    std = jnp.sqrt(var)

    combined = coef_ref[0] * mean + coef_ref[1] * std       # (Bt, C), C on lanes

    # ---- k-tap zero-padded cross-correlation along C ------------------------
    # XLU lane rolls of the tiny stats row.  The rolled channel iota identifies
    # the true source channel per lane, so the correct filter tap (and the zero
    # padding at the borders / wrap-around) is selected per lane regardless of
    # the roll direction convention.
    ch = jax.lax.broadcasted_iota(jnp.int32, (bt, c), 1)
    amounts = [0] + [a for d in range(1, pad + 1) for a in (d, c - d)]
    conv = jnp.zeros((bt, c), jnp.float32)
    for r in amounts:
        if r == 0:
            val, src = combined, ch
        else:
            val = pltpu.roll(combined, shift=r, axis=1)
            src = pltpu.roll(ch, shift=r, axis=1)
        tap = src - ch + pad                 # filter-tap index feeding this lane
        w_lane = jnp.zeros((bt, c), jnp.float32)
        for j in range(k):
            w_lane = jnp.where(tap == j, tap_ref[j], w_lane)
        conv = conv + w_lane * val

    gate = jax.nn.sigmoid(conv)                              # (Bt, C)

    # ---- gate the full block (broadcast over the spatial/lane axis) ---------
    o_ref[...] = (x * gate[:, :, None]).astype(o_ref.dtype)


# --------------------------------- wrapper -----------------------------------

def mca_gate_pallas(x_nchw, conv_w, weight, *, target_block_bytes=1 << 20,
                    donate_x=False):
    """MCAGate forward.

    x_nchw : [B, C, H, W]   (PyTorch layout; dtype preserved end-to-end)
    conv_w : [k]            weights of Conv2d(1, 1, (1, k), bias=False)
    weight : [2]            learned mixing parameter (pre-sigmoid)
    """
    B, C, H, W = x_nchw.shape
    HW = H * W
    k = int(conv_w.shape[0])
    pad = (k - 1) // 2
    assert C >= k + pad, "channel conv via lane-rolls assumes C >= k + pad"

    # Fold mixing weights: 0.5*(a+s) + sig(w0)*a + sig(w1)*s == c0*a + c1*s
    sw = jax.nn.sigmoid(weight.astype(jnp.float32))
    coefs = jnp.stack([0.5 + sw[0], 0.5 + sw[1]])
    taps = conv_w.astype(jnp.float32)

    # ---- block sizing (amortize per-step overhead, keep v7x 2-TC busy) ------
    per_elem = C * HW * jnp.dtype(x_nchw.dtype).itemsize
    bt = 1
    for cand in range(1, B + 1):          # largest divisor of B within budget
        if B % cand == 0 and cand * per_elem <= target_block_bytes:
            bt = cand
    if B >= 2 and B // bt < 2:            # keep >=2 parallel steps for v7x 2 TCs
        for cand in range(bt, 0, -1):
            if B % cand == 0 and B // cand >= 2:
                bt = cand
                break
    steps = B // bt
    block_bytes = bt * per_elem
    # TODO(synk): for very large C*HW (single-element block > ~8 MiB) add an
    # HW-tiled two-phase (stats-accumulate, then gate) variant for v7x's 64 MiB VMEM.
    vmem_limit = int(min(64 * 2**20, max(16 * 2**20, 8 * block_bytes)))

    x3 = x_nchw.reshape(B, C, HW)         # lane-dense view (HW on lanes)

    out = pl.pallas_call(
        partial(_mca_gate_kernel, k=k, pad=pad),
        out_shape=jax.ShapeDtypeStruct((B, C, HW), x_nchw.dtype),
        grid=(steps,),
        in_specs=[
            pl.BlockSpec(memory_space=pltpu.MemorySpace.SMEM),   # coefs (scalars)
            pl.BlockSpec(memory_space=pltpu.MemorySpace.SMEM),   # conv taps
            pl.BlockSpec((bt, C, HW), lambda b: (b, 0, 0)),      # x block
        ],
        out_specs=pl.BlockSpec((bt, C, HW), lambda b: (b, 0, 0)),
        compiler_params=pltpu.CompilerParams(
            dimension_semantics=("parallel",),
            vmem_limit_bytes=vmem_limit),
        input_output_aliases=({2: 0} if donate_x else {}),
    )(coefs, taps, x3)
    return out.reshape(B, C, H, W)


# ---------------------------- pure-JAX reference ----------------------------

def mca_gate_ref(x, conv_w, weight):
    B, C, H, W = x.shape
    flat = x.reshape(B, C, H * W).astype(jnp.float32)
    avg = jnp.mean(flat, axis=2)
    std = jnp.std(flat, axis=2, ddof=1)                 # unbiased, like torch .std
    sw = jax.nn.sigmoid(weight.astype(jnp.float32))
    out = 0.5 * (avg + std) + sw[0] * avg + sw[1] * std            # (B, C)
    k = conv_w.shape[0]
    pad = (k - 1) // 2
    padded = jnp.pad(out, ((0, 0), (pad, pad)))
    conv = sum(conv_w[j] * padded[:, j:j + C] for j in range(k))   # (B, C)
    gate = jax.nn.sigmoid(conv)
    return (x.astype(jnp.float32) * gate[:, :, None, None]).astype(x.dtype)


# ---------------------------------- main -------------------------------------

if __name__ == "__main__":
    key = jax.random.PRNGKey(0)
    kx, kw, kc = jax.random.split(key, 3)

    B, C, H, W = 2, 32, 16, 16
    k_size = 3

    x = jax.random.normal(kx, (B, C, H, W), jnp.float32)           # NCHW like PyTorch
    weight = jax.random.uniform(kw, (2,), jnp.float32)             # nn.Parameter(torch.rand(2))
    bound = 1.0 / math.sqrt(k_size)                                # PyTorch default conv init bound
    conv_w = jax.random.uniform(kc, (k_size,), jnp.float32, -bound, bound)

    out = jax.block_until_ready(mca_gate_pallas(x, conv_w, weight))
    ref = jax.block_until_ready(mca_gate_ref(x, conv_w, weight))

    assert out.shape == (B, C, H, W)
    err = float(jnp.max(jnp.abs(out - ref)))
    assert jnp.allclose(out, ref, atol=1e-4, rtol=1e-4), f"max abs err = {err}"
    print("KERNEL_OK")
</pallas_src>

<mosaic_0001>
module attributes {stable_mosaic.version = 11 : i64} {
  func.func @_mca_gate_kernel(%arg0: i32, %arg1: memref<2xf32, #tpu.memory_space<smem>>, %arg2: memref<3xf32, #tpu.memory_space<smem>>, %arg3: memref<1x32x256xf32, #tpu.memory_space<vmem>>, %arg4: memref<1x32x256xf32, #tpu.memory_space<vmem>>) attributes {dimension_semantics = [#tpu.dimension_semantics<parallel>], iteration_bounds = array<i64: 2>, scalar_prefetch = 0 : i64, scratch_operands = 0 : i64, tpu.core_type = #tpu.core_type<tc>, window_params = [{transform_indices = @transform_0, window_bounds = array<i64: 2>}, {transform_indices = @transform_1, window_bounds = array<i64: 3>}, {transform_indices = @transform_2, window_bounds = array<i64: 1, 32, 256>}, {transform_indices = @transform_3, window_bounds = array<i64: 1, 32, 256>}]} {
    %c0 = arith.constant 0 : index
    %c0_0 = arith.constant 0 : index
    %c0_1 = arith.constant 0 : index
    %0 = vector.load %arg3[%c0, %c0_0, %c0_1] : memref<1x32x256xf32, #tpu.memory_space<vmem>>, vector<1x32x256xf32>
    %cst = arith.constant dense<0.000000e+00> : vector<1x32xf32>
    %1 = vector.multi_reduction <add>, %0, %cst [2] : vector<1x32x256xf32> to vector<1x32xf32>
    %2 = arith.mulf %0, %0 : vector<1x32x256xf32>
    %cst_2 = arith.constant dense<0.000000e+00> : vector<1x32xf32>
    %3 = vector.multi_reduction <add>, %2, %cst_2 [2] : vector<1x32x256xf32> to vector<1x32xf32>
    %cst_3 = arith.constant 3.906250e-03 : f32
    %4 = vector.broadcast %cst_3 : f32 to vector<1x32xf32>
    %5 = arith.mulf %1, %4 : vector<1x32xf32>
    %6 = arith.mulf %1, %5 : vector<1x32xf32>
    %7 = arith.subf %3, %6 : vector<1x32xf32>
    %cst_4 = arith.constant 0.000000e+00 : f32
    %8 = vector.broadcast %cst_4 : f32 to vector<1x32xf32>
    %9 = arith.maximumf %7, %8 : vector<1x32xf32>
    %cst_5 = arith.constant 0.00392156886 : f32
    %10 = vector.broadcast %cst_5 : f32 to vector<1x32xf32>
    %11 = arith.mulf %9, %10 : vector<1x32xf32>
    %12 = math.sqrt %11 : vector<1x32xf32>
    %c0_6 = arith.constant 0 : index
    %13 = memref.load %arg1[%c0_6] : memref<2xf32, #tpu.memory_space<smem>>
    %14 = vector.broadcast %13 : f32 to vector<1x32xf32>
    %15 = arith.mulf %14, %5 : vector<1x32xf32>
    %c1 = arith.constant 1 : index
    %16 = memref.load %arg1[%c1] : memref<2xf32, #tpu.memory_space<smem>>
    %17 = vector.broadcast %16 : f32 to vector<1x32xf32>
    %18 = arith.mulf %17, %12 : vector<1x32xf32>
    %19 = arith.addf %15, %18 : vector<1x32xf32>
    %20 = tpu.iota {dimensions = array<i32: 1>} : vector<1x32xi32>
    %cst_7 = arith.constant 0.000000e+00 : f32
    %21 = vector.broadcast %cst_7 : f32 to vector<1x32xf32>
    %22 = arith.subi %20, %20 : vector<1x32xi32>
    %c1_i32 = arith.constant 1 : i32
    %23 = vector.broadcast %c1_i32 : i32 to vector<1x32xi32>
    %24 = arith.addi %22, %23 : vector<1x32xi32>
    %cst_8 = arith.constant 0.000000e+00 : f32
    %25 = vector.broadcast %cst_8 : f32 to vector<1x32xf32>
    %c0_i32 = arith.constant 0 : i32
    %26 = vector.broadcast %c0_i32 : i32 to vector<1x32xi32>
    %27 = arith.cmpi eq, %24, %26 : vector<1x32xi32>
    %c0_9 = arith.constant 0 : index
    %28 = memref.load %arg2[%c0_9] : memref<3xf32, #tpu.memory_space<smem>>
    %29 = vector.broadcast %28 : f32 to vector<1x32xf32>
    %30 = arith.select %27, %29, %25 : vector<1x32xi1>, vector<1x32xf32>
    %c1_i32_10 = arith.constant 1 : i32
    %31 = vector.broadcast %c1_i32_10 : i32 to vector<1x32xi32>
    %32 = arith.cmpi eq, %24, %31 : vector<1x32xi32>
    %c1_11 = arith.constant 1 : index
    %33 = memref.load %arg2[%c1_11] : memref<3xf32, #tpu.memory_space<smem>>
    %34 = vector.broadcast %33 : f32 to vector<1x32xf32>
    %35 = arith.select %32, %34, %30 : vector<1x32xi1>, vector<1x32xf32>
    %c2_i32 = arith.constant 2 : i32
    %36 = vector.broadcast %c2_i32 : i32 to vector<1x32xi32>
    %37 = arith.cmpi eq, %24, %36 : vector<1x32xi32>
    %c2 = arith.constant 2 : index
    %38 = memref.load %arg2[%c2] : memref<3xf32, #tpu.memory_space<smem>>
    %39 = vector.broadcast %38 : f32 to vector<1x32xf32>
    %40 = arith.select %37, %39, %35 : vector<1x32xi1>, vector<1x32xf32>
    %41 = arith.mulf %40, %19 : vector<1x32xf32>
    %42 = arith.addf %21, %41 : vector<1x32xf32>
    %c1_i32_12 = arith.constant 1 : i32
    %43 = tpu.dynamic_rotate %19 by %c1_i32_12 dim 1 : vector<1x32xf32>, i32 -> vector<1x32xf32>
    %c1_i32_13 = arith.constant 1 : i32
    %44 = tpu.dynamic_rotate %20 by %c1_i32_13 dim 1 : vector<1x32xi32>, i32 -> vector<1x32xi32>
    %45 = arith.subi %44, %20 : vector<1x32xi32>
    %c1_i32_14 = arith.constant 1 : i32
    %46 = vector.broadcast %c1_i32_14 : i32 to vector<1x32xi32>
    %47 = arith.addi %45, %46 : vector<1x32xi32>
    %cst_15 = arith.constant 0.000000e+00 : f32
    %48 = vector.broadcast %cst_15 : f32 to vector<1x32xf32>
    %c0_i32_16 = arith.constant 0 : i32
    %49 = vector.broadcast %c0_i32_16 : i32 to vector<1x32xi32>
    %50 = arith.cmpi eq, %47, %49 : vector<1x32xi32>
    %c0_17 = arith.constant 0 : index
    %51 = memref.load %arg2[%c0_17] : memref<3xf32, #tpu.memory_space<smem>>
    %52 = vector.broadcast %51 : f32 to vector<1x32xf32>
    %53 = arith.select %50, %52, %48 : vector<1x32xi1>, vector<1x32xf32>
    %c1_i32_18 = arith.constant 1 : i32
    %54 = vector.broadcast %c1_i32_18 : i32 to vector<1x32xi32>
    %55 = arith.cmpi eq, %47, %54 : vector<1x32xi32>
    %c1_19 = arith.constant 1 : index
    %56 = memref.load %arg2[%c1_19] : memref<3xf32, #tpu.memory_space<smem>>
    %57 = vector.broadcast %56 : f32 to vector<1x32xf32>
    %58 = arith.select %55, %57, %53 : vector<1x32xi1>, vector<1x32xf32>
    %c2_i32_20 = arith.constant 2 : i32
    %59 = vector.broadcast %c2_i32_20 : i32 to vector<1x32xi32>
    %60 = arith.cmpi eq, %47, %59 : vector<1x32xi32>
    %c2_21 = arith.constant 2 : index
    %61 = memref.load %arg2[%c2_21] : memref<3xf32, #tpu.memory_space<smem>>
    %62 = vector.broadcast %61 : f32 to vector<1x32xf32>
    %63 = arith.select %60, %62, %58 : vector<1x32xi1>, vector<1x32xf32>
    %64 = arith.mulf %63, %43 : vector<1x32xf32>
    %65 = arith.addf %42, %64 : vector<1x32xf32>
    %c31_i32 = arith.constant 31 : i32
    %66 = tpu.dynamic_rotate %19 by %c31_i32 dim 1 : vector<1x32xf32>, i32 -> vector<1x32xf32>
    %c31_i32_22 = arith.constant 31 : i32
    %67 = tpu.dynamic_rotate %20 by %c31_i32_22 dim 1 : vector<1x32xi32>, i32 -> vector<1x32xi32>
    %68 = arith.subi %67, %20 : vector<1x32xi32>
    %c1_i32_23 = arith.constant 1 : i32
    %69 = vector.broadcast %c1_i32_23 : i32 to vector<1x32xi32>
    %70 = arith.addi %68, %69 : vector<1x32xi32>
    %cst_24 = arith.constant 0.000000e+00 : f32
    %71 = vector.broadcast %cst_24 : f32 to vector<1x32xf32>
    %c0_i32_25 = arith.constant 0 : i32
    %72 = vector.broadcast %c0_i32_25 : i32 to vector<1x32xi32>
    %73 = arith.cmpi eq, %70, %72 : vector<1x32xi32>
    %c0_26 = arith.constant 0 : index
    %74 = memref.load %arg2[%c0_26] : memref<3xf32, #tpu.memory_space<smem>>
    %75 = vector.broadcast %74 : f32 to vector<1x32xf32>
    %76 = arith.select %73, %75, %71 : vector<1x32xi1>, vector<1x32xf32>
    %c1_i32_27 = arith.constant 1 : i32
    %77 = vector.broadcast %c1_i32_27 : i32 to vector<1x32xi32>
    %78 = arith.cmpi eq, %70, %77 : vector<1x32xi32>
    %c1_28 = arith.constant 1 : index
    %79 = memref.load %arg2[%c1_28] : memref<3xf32, #tpu.memory_space<smem>>
    %80 = vector.broadcast %79 : f32 to vector<1x32xf32>
    %81 = arith.select %78, %80, %76 : vector<1x32xi1>, vector<1x32xf32>
    %c2_i32_29 = arith.constant 2 : i32
    %82 = vector.broadcast %c2_i32_29 : i32 to vector<1x32xi32>
    %83 = arith.cmpi eq, %70, %82 : vector<1x32xi32>
    %c2_30 = arith.constant 2 : index
    %84 = memref.load %arg2[%c2_30] : memref<3xf32, #tpu.memory_space<smem>>
    %85 = vector.broadcast %84 : f32 to vector<1x32xf32>
    %86 = arith.select %83, %85, %81 : vector<1x32xi1>, vector<1x32xf32>
    %87 = arith.mulf %86, %66 : vector<1x32xf32>
    %88 = arith.addf %65, %87 : vector<1x32xf32>
    %89 = arith.negf %88 : vector<1x32xf32>
    %90 = math.exp %89 : vector<1x32xf32>
    %cst_31 = arith.constant 1.000000e+00 : f32
    %91 = vector.broadcast %cst_31 : f32 to vector<1x32xf32>
    %92 = arith.addf %91, %90 : vector<1x32xf32>
    %93 = arith.divf %91, %92 : vector<1x32xf32>
    %94 = vector.shape_cast %93 : vector<1x32xf32> to vector<1x32x1xf32>
    %95 = vector.broadcast %94 : vector<1x32x1xf32> to vector<1x32x256xf32>
    %96 = arith.mulf %0, %95 : vector<1x32x256xf32>
    %c0_32 = arith.constant 0 : index
    %c0_33 = arith.constant 0 : index
    %c0_34 = arith.constant 0 : index
    %97 = vector.load %arg4[%c0_32, %c0_33, %c0_34] : memref<1x32x256xf32, #tpu.memory_space<vmem>>, vector<1x32x256xf32>
    tpu.vector_store %arg4[%c0_32, %c0_33, %c0_34], %96 {strides = array<i32>} : memref<1x32x256xf32, #tpu.memory_space<vmem>>, vector<1x32x256xf32>,
    return
  }
  func.func @transform_0(%arg0: i32) -> i32 {
    %c0_i32 = arith.constant 0 : i32
    %c0_i32_0 = arith.constant 0 : i32
    return %c0_i32 : i32
  }
  func.func @transform_1(%arg0: i32) -> i32 {
    %c0_i32 = arith.constant 0 : i32
    %c0_i32_0 = arith.constant 0 : i32
    return %c0_i32 : i32
  }
  func.func @transform_2(%arg0: i32) -> (i32, i32, i32) {
    %c0_i32 = arith.constant 0 : i32
    %c0_i32_0 = arith.constant 0 : i32
    %c0_i32_1 = arith.constant 0 : i32
    return %arg0, %c0_i32, %c0_i32_0 : i32, i32, i32
  }
  func.func @transform_3(%arg0: i32) -> (i32, i32, i32) {
    %c0_i32 = arith.constant 0 : i32
    %c0_i32_0 = arith.constant 0 : i32
    %c0_i32_1 = arith.constant 0 : i32
    return %arg0, %c0_i32, %c0_i32_0 : i32, i32, i32
  }
}

</mosaic_0001>

<bundles_post_ra>
// kernel: tpu_custom_call.1
= control target key start
LH: loop header
LB: loop body
LE: loop exit
PB: predicated region body
PF: predicated region fallthrough
CT: control target
= control target key end

     0   :  { %s1259_s0 = inlined_call_operand.hbm [shape: f32[2], index: 0, kind: input, shape index: {}]   ;;  %s1260_s1 = inlined_call_operand.hbm [shape: f32[3], index: 1, kind: input, shape index: {}]   ;;  %s1261_s2 = inlined_call_operand.hbm [shape: f32[2,32,256], index: 2, kind: input, shape index: {}]   ;;  %s1262_s3 = inlined_call_operand.hbm [shape: f32[2,32,256], index: 3, kind: output, shape index: {}]  }
   0x1   :  { %1263 = sst [smem:[#allocation14_spill]] %s1259_s0 }
   0x2   :  { %8 = vsyncpa [#allocation5], 0 }
   0x3   :  { %9 = vsyncpa [#allocation7], 0 }
   0x4   :  { %10 = vsyncpa [#allocation3], 0 }
   0x5   :  { %12 = vsyncpa [#allocation3 + $0x1], 0 }
   0x6   :  { %13 = vsyncpa [#allocation4], 0 }
   0x7   :  { %15 = vsyncpa [#allocation4 + $0x1], 0  ;;  %s1005_s12 = smov 0   ;;  %s1007_s13 = smov 0  }
   0x8   :  { %s1009_s14 = smov 0   ;;  %s1011_s15 = smov 0  }
   0x9 LB: > { %s1026_s16 = sadd.s32 4294967295, %s973_s15   ;;  %s702_s17 = sadd.s32 4294967294, %s973_s15   ;;  %s973_s15 = sphi %s1011_s15, %s1275_s15   ;;  %s969_s14 = sphi %s1009_s14, %s1274_s14   ;;  %s965_s13 = sphi %s1007_s13, %s1273_s13   ;;  %s961_s12 = sphi %s1005_s12, %s1272_s12  }
   0xa   : > { %s1030_s18 = sadd.s32 1, %s973_s15   ;;  %s70_s19 = sadd.s32 1, %s969_s14 }
   0xb   : > { %s67_s20 = ssub.s32 %s973_s15, %s1030_s18  ;;  %p77_p0 = scmp.ne.s32.totalorder %s969_s14, %s965_s13 }
   0xc   : > { %p68_p1 = scmp.eq.s32.totalorder %s67_s20, 0  ;;  %p78_p2 = scmp.eq.s32.totalorder %s973_s15, 0 }
   0xd   : > { %p83_p3 = scmp.ne.s32.totalorder %s965_s13, %s961_s12  ;;  %p84_p4 = scmp.eq.s32.totalorder %s1026_s16, 0 }
   0xe   : > { %s1042_s21 = scalar_select %p68_p1, %s969_s14, %s70_s19  }
   0xf   : > { %p1044_p5 = por %p78_p2, %p77_p0  ;;  %p1050_p6 = por %p84_p4, %p83_p3 }
  0x10   : > { %p107_p7 = scmp.eq.s32.totalorder %s1026_s16, 1  ;;  %p113_p8 = scmp.eq.s32.totalorder %s702_s17, 1 }
  0x11   : > { %p703_p9 = scmp.ge.s32.totalorder %s973_s15, 1  ;;  %p120_p10 = scmp.lt.s32.totalorder %s973_s15, 3 }
  0x12   : > { %p1057_p11 = por %p107_p7, %p77_p0  ;;  %p1061_p12 = por %p113_p8, %p83_p3 }
  0x13   : > { %p1065_p13 = pnand %p703_p9, %p120_p10  ;;  %s1269_s0 = sld [smem:[#allocation14_spill]] }
  0x14   : > { %p758_p2 = scmp.lt.s32.totalorder %s973_s15, 2  ;;  %s142_s5 = sshll.u32 %s1260_s1, 4  ;;  %s143_s5 = int_to_ptr.hbm [resolvable:$true] %s142_s5 }
  0x15   : > { %p741_p1 = pneg %p1065_p13  ;;  %s975_s7 = smov [#allocation2]  }
  0x16   : > { %p1083_p7 = pnand %p758_p2, %p1044_p5  ;;  %s153_s8 = sand.u32 1, %s969_s14  }
  0x17   : > { %p742_p3 = pnand %p741_p1, %p84_p4  ;;  %s976_s9 = smov [#allocation6]  }
  0x18   : > { %s707_s10 = sshll.u32 %s153_s8, 6  ;;  %s727_s11 = sshll.u32 %s973_s15, 6 }
  0x19   : > { %s132_s29 = sshll.u32 %s1269_s0, 4  ;;  %s162_s20 = scalar_lea.hbm %s1261_s2, %s727_s11  ;;  %s133_s29 = int_to_ptr.hbm [resolvable:$true] %s132_s29 }
  0x1a   : > { %744 = dma.hbm_to_smem (!%p742_p3), %s133_s29, 16, %s975_s7, [#allocation5]  }
  0x1b   : > { %747 = dma.hbm_to_smem (!%p742_p3), %s143_s5, 16, %s976_s9, [#allocation7]  }
  0x1c   : > { %s157_s27 = scalar_lea.vmem [#allocation8], %s707_s10  ;;  %s163_s22 = sshll.u32 %s162_s20, 4  ;;  %s164_s22 = int_to_ptr.hbm [resolvable:$true] %s163_s22 }
  0x1d   : > { %s165_s28 = sshll.u32 %s157_s27, 4  ;;  %s154_s30 = scalar_lea.sflag [#allocation3], %s153_s8  ;;  %s166_s28 = int_to_ptr.vmem [resolvable:$true] %s165_s28 }
  0x1e   : > { %s869_s4 = sshra.s32 %s164_s22, 4  ;;  %p873_p8 = pneg %p1083_p7  ;;  %s870_s4 = int_to_ptr.hbm [resolvable:$true] %s869_s4 }
  0x1f   : > { %s871_s0 = scalar_lea.hbm %s870_s4, 64  ;;  %s876_s7 = scalar_lea.hbm %s1261_s2, 128 }
  0x20   : > { %p872_p5 = scmp.ne.s32.totalorder %s870_s4, %s871_s0  ;;  %p877_p1 = scmp.lt.s32.totalorder %s870_s4, %s1261_s2 }
  0x21   : > { %p878_p2 = scmp.lt.s32.totalorder %s876_s7, %s871_s0 }
  0x22   : > { %p874_p9 = pnand %p873_p8, %p872_p5 }
  0x23   : > { %p879_p3 = por %p878_p2, %p877_p1 }
  0x24   : > { %p875_p10 = pneg %p874_p9 }
  0x26   : > { %p880_p0 = pnand %p879_p3, %p875_p10 }
  0x28   : > { %883 = shalt.err (!%p880_p0)
}
  0x29   : > { %s977_s8 = smov 256   ;;  %s978_s10 = smov 16  }
  0x2a   : > { %751 = dma.hbm_to_vmem [thread:$0]  (!%p1083_p7), %s164_s22, 1024, %s166_s28, %s154_s30, %s977_s8, %s977_s8, %s978_s10  }
  0x2b   : > { %177 = sbr.rel (%p1065_p13) target bundleno = 726 (0x2d6), region = 32 }
  0x30   : > { %944 = dma.done.wait (%p84_p4), [#allocation5], 16  }
  0x31   : > { %946 = vsyncadd (%p84_p4), [#allocation5], 4294967280 }
  0x32   : > { %948 = dma.done.wait (%p84_p4), [#allocation7], 16  }
  0x33   : > { %950 = vsyncadd (%p84_p4), [#allocation7], 4294967280  ;;  %s1113_s0 = sand.u32 1, %s965_s13  }
  0x34   : > { %s713_s26 = sshll.u32 %s1113_s0, 6  ;;  %s190_s6 = scalar_lea.sflag [#allocation3], %s1113_s0 }
  0x35   : > { %s193_s17 = scalar_lea.vmem [#allocation8], %s713_s26 }
  0x36   : > { %952 = dma.done.wait (%p1050_p6), %s190_s6, 1024  }
  0x37   : > { %954 = vsyncadd (%p1050_p6), %s190_s6, 4294966272 }
  0x38   : > { %199 = sfence }
  0x39   : > { %v1123_v0 = vld [vmem:[%s193_s17 + $0x20] sm:$0xff]  ;;  %v1125_v1 = vld [vmem:[%s193_s17 + $0x28] sm:$0xff]  ;;  %v1139_v9 = vld [vmem:[%s193_s17 + $0x30] sm:$0xff]  ;;  %v342_v24 = vlaneseq  ;;  %s979_s23 = smov 32   ;;  %s980_s19 = smov 31   ;;  %vm361_vm8 = vcmask 130112  }
  0x3a   : > { %v1127_v2 = vld [vmem:[%s193_s17] sm:$0xff]  ;;  %v232_v3 = vadd.f32 %v1125_v1, %v1123_v0  ;;  %v1131_v4 = vld [vmem:[%s193_s17 + $0x8] sm:$0xff]  ;;  %v1141_v10 = vld [vmem:[%s193_s17 + $0x38] sm:$0xff]  ;;  %v244_v18 = vmul.f32 %v1139_v9, %v1139_v9  ;;  %v242_v20 = vmul.f32 %v1123_v0, %v1123_v0  ;;  %v243_v21 = vmul.f32 %v1125_v1, %v1125_v1  ;;  %s326_s20 = sld [smem:[#allocation2]]  ;;  %s981_s28 = smov 1  }
  0x3b   : > { %v238_v5 = vmul.f32 %v1127_v2, %v1127_v2  ;;  %v226_v6 = vadd.f32 %v1131_v4, %v1127_v2  ;;  %v239_v7 = vmul.f32 %v1131_v4, %v1131_v4  ;;  %v1143_v11 = vld [vmem:[%s193_s17 + $0x10] sm:$0xff]  ;;  %v1145_v12 = vld [vmem:[%s193_s17 + $0x18] sm:$0xff]  ;;  %v235_v15 = vadd.f32 %v1141_v10, %v1139_v9  ;;  %s715_s27 = sld [smem:[#allocation2 + $0x1]]  ;;  %s217_s29 = scalar_lea.vmem [#allocation9], %s713_s26 }
  0x3c   : > { %233 = vadd.xlane.f32.xlu1 %v232_v3  ;;  %v240_v13 = vmul.f32 %v1143_v11, %v1143_v11  ;;  %v241_v14 = vmul.f32 %v1145_v12, %v1145_v12  ;;  %v229_v16 = vadd.f32 %v1145_v12, %v1143_v11  ;;  %v245_v19 = vmul.f32 %v1141_v10, %v1141_v10  ;;  %s390_s22 = sld [smem:[#allocation6]]  ;;  %s728_s5 = sshll.u32 %s1026_s16, 6 }
  0x3d   : > { %227 = vadd.xlane.f32.xlu0 %v226_v6  ;;  %v246_v8 = vadd.f32 %v239_v7, %v238_v5  ;;  %v252_v23 = vadd.f32 %v243_v21, %v242_v20  ;;  %v1164_v27 = vand.u32 127, %v342_v24  ;;  %vm365_vm9 = vcmask 195712   ;;  %s716_s30 = sld [smem:[#allocation6 + $0x1]]  ;;  %s603_s11 = scalar_lea.hbm %s1262_s3, %s728_s5 }
  0x3e   : > { %v249_v17 = vadd.f32 %v241_v14, %v240_v13  ;;  %v255_v22 = vadd.f32 %v245_v19, %v244_v18  ;;  %vm369_vm10 = vcmask 261312   ;;  %vm372_vm11 = vcmask 1047808   ;;  %s717_s4 = sld [smem:[#allocation6 + $0x2]]  ;;  %s604_s8 = sshll.u32 %s217_s29, 4  ;;  %s605_s8 = int_to_ptr.vmem [resolvable:$true] %s604_s8 }
  0x3f   : > { %247 = vadd.xlane.f32.xlu2 %v246_v8  ;;  %s606_s10 = sshll.u32 %s603_s11, 4  ;;  %s592_s16 = scalar_lea.sflag [#allocation4], %s1113_s0  ;;  %s607_s10 = int_to_ptr.hbm [resolvable:$true] %s606_s10 }
  0x40   : > { %s913_s26 = sshra.s32 %s607_s10, 4  ;;  %s914_s26 = int_to_ptr.hbm [resolvable:$true] %s913_s26 }
  0x41   : > { %s915_s6 = scalar_lea.hbm %s914_s26, 64  ;;  %p920_p0 = scmp.lt.s32.totalorder %s914_s26, %s1262_s3 }
  0x42   : > { %p916_p4 = scmp.ne.s32.totalorder %s914_s26, %s915_s6 }
  0x44   : > { %236 = vadd.xlane.f32.xlu1 %v235_v15  ;;  %p917_p6 = pnand %p916_p4, %p1057_p11 }
  0x45   : > { %230 = vadd.xlane.f32.xlu0 %v229_v16  ;;  %v327_v16 = vstv %s326_s20 }
  0x46   : > { %p918_p13 = pneg %p917_p6 }
  0x47   : > { %250 = vadd.xlane.f32.xlu2 %v249_v17 }
  0x4c   : > { %256 = vadd.xlane.f32.xlu1 %v255_v22 }
  0x4d   : > { %253 = vadd.xlane.f32.xlu0 %v252_v23  ;;  %v333_v23 = vstv %s715_s27 }
  0x5f   : > { %379 = vrot.lane.b32.xlu2 %v1164_v27, %s979_s23 }
  0x67   : > { %385 = vrot.lane.b32.xlu2 %v1164_v27, %s980_s19  ;;  %s919_s19 = scalar_lea.hbm %s1262_s3, 128 }
  0x68   : > { %p921_p7 = scmp.lt.s32.totalorder %s919_s19, %s915_s6 }
  0x6a   : > { %p922_p5 = por %p921_p7, %p920_p0 }
  0x6c   : > { %p923_p8 = pnand %p922_p5, %p918_p13 }
  0xaf   : > { %v234_v25 = vpop.xlane.xlu1 %233 }
  0xb0   : > { %v228_v26 = vpop.xlane.xlu0 %227  ;;  %v1172_v39 = vmul.f32 0.00390625, %v234_v25 }
  0xb1   : > { %v1166_v28 = vmul.f32 0.00390625, %v228_v26 }
  0xb2   : > { %v248_v29 = vpop.xlane.xlu2 %247  ;;  %v264_v43 = vmul.f32 %v1172_v39, %v234_v25 }
  0xb3   : > { %v262_v30 = vmul.f32 %v1166_v28, %v228_v26  ;;  %v328_v25 = vmul.f32 %v327_v16, %v1166_v28 }
  0xb5   : > { %v266_v31 = vsub.f32 %v248_v29, %v262_v30 }
  0xb7   : > { %v270_v32 = vmax.f32 %v266_v31, 0.0  ;;  %v237_v33 = vpop.xlane.xlu1 %236 }
  0xb8   : > { %v231_v34 = vpop.xlane.xlu0 %230  ;;  %v261_v37 = vmul.f32 0.00390625, %v237_v33 }
  0xb9   : > { %v274_v35 = vmul.f32 0.003921569, %v270_v32  ;;  %v259_v36 = vmul.f32 0.00390625, %v231_v34 }
  0xba   : > { %v251_v38 = vpop.xlane.xlu2 %250  ;;  %v265_v42 = vmul.f32 %v261_v37, %v237_v33  ;;  %v331_v31 = vmul.f32 %v327_v16, %v261_v37 }
  0xbb   : > { %815 = vrsqrt.f32 %v274_v35  ;;  %v263_v40 = vmul.f32 %v259_v36, %v231_v34  ;;  %vm285_vm0 = vcmp.eq.f32.partialorder %v274_v35, inf  ;;  %v288_v19 = vand.u32 2147483648, %v274_v35 }
  0xbc   : > { %vm287_vm1 = vcmp.eq.f32.partialorder %v274_v35, 0.0  ;;  %v329_v34 = vmul.f32 %v327_v16, %v259_v36 }
  0xbd   : > { %v267_v41 = vsub.f32 %v251_v38, %v263_v40 }
  0xbf   : > { %v271_v44 = vmax.f32 %v267_v41, 0.0  ;;  %v257_v45 = vpop.xlane.xlu1 %256 }
  0xc0   : > { %v269_v46 = vsub.f32 %v257_v45, %v265_v42  ;;  %v254_v47 = vpop.xlane.xlu0 %253 }
  0xc1   : > { %v816_v48 = vpop.eup %815  ;;  %v275_v49 = vmul.f32 0.003921569, %v271_v44  ;;  %v268_v50 = vsub.f32 %v254_v47, %v264_v43 }
  0xc2   : > { %v279_v51 = vmul.f32 %v816_v48, %v274_v35  ;;  %v273_v52 = vmax.f32 %v269_v46, 0.0 }
  0xc3   : > { %817 = vrsqrt.f32 %v275_v49  ;;  %v272_v53 = vmax.f32 %v268_v50, 0.0  ;;  %vm297_vm2 = vcmp.eq.f32.partialorder %v275_v49, inf  ;;  %v300_v32 = vand.u32 2147483648, %v275_v49 }
  0xc4   : > { %v277_v54 = vmul.f32 0.003921569, %v273_v52  ;;  %v280_v55 = vmul.f32 %v816_v48, %v279_v51  ;;  %vm299_vm3 = vcmp.eq.f32.partialorder %v275_v49, 0.0  ;;  %v367_v52 = vadd.s32 4294967272, %v1164_v27 }
  0xc5   : > { %v276_v56 = vmul.f32 0.003921569, %v272_v53  ;;  %v330_v53 = vmul.f32 %v327_v16, %v1172_v39 }
  0xc6   : > { %819 = vrsqrt.f32 %v277_v54  ;;  %v281_v57 = vmul.f32 0.5, %v280_v55  ;;  %vm321_vm4 = vcmp.eq.f32.partialorder %v277_v54, inf  ;;  %v324_v45 = vand.u32 2147483648, %v277_v54 }
  0xc7   : > { %821 = vrsqrt.f32 %v276_v56  ;;  %vm309_vm5 = vcmp.eq.f32.partialorder %v276_v56, inf  ;;  %v312_v46 = vand.u32 2147483648, %v276_v56  ;;  %vm323_vm6 = vcmp.eq.f32.partialorder %v277_v54, 0.0 }
  0xc8   : > { %v282_v58 = vsub.f32 1.5, %v281_v57  ;;  %vm311_vm7 = vcmp.eq.f32.partialorder %v276_v56, 0.0  ;;  %v363_v57 = vadd.s32 4294967280, %v1164_v27 }
  0xc9   : > { %v818_v59 = vpop.eup %817 }
  0xca   : > { %v291_v60 = vmul.f32 %v818_v59, %v275_v49  ;;  %v283_v61 = vmul.f32 %v816_v48, %v282_v58 }
  0xcc   : > { %v820_v62 = vpop.eup %819  ;;  %v292_v63 = vmul.f32 %v818_v59, %v291_v60  ;;  %v284_v5 = vmul.f32 %v283_v61, %v274_v35 }
  0xcd   : > { %v822_v3 = vpop.eup %821  ;;  %v315_v6 = vmul.f32 %v820_v62, %v277_v54 }
  0xce   : > { %v303_v7 = vmul.f32 %v822_v3, %v276_v56  ;;  %v293_v8 = vmul.f32 0.5, %v292_v63  ;;  %v286_v17 = vsel %vm285_vm0, %v274_v35, %v284_v5  ;;  %v359_v35 = vadd.s32 4294967288, %v1164_v27 }
  0xcf   : > { %v316_v13 = vmul.f32 %v820_v62, %v315_v6  ;;  %v289_v26 = vsel %vm287_vm1, %v288_v19, %v286_v17 }
  0xd0   : > { %v294_v14 = vsub.f32 1.5, %v293_v8  ;;  %v304_v15 = vmul.f32 %v822_v3, %v303_v7  ;;  %v334_v43 = vmul.f32 %v333_v23, %v289_v26  ;;  %v403_v8 = vshrl.u32 %v342_v24, 7 }
  0xd1   : > { %v317_v18 = vmul.f32 0.5, %v316_v13 }
  0xd2   : > { %v295_v20 = vmul.f32 %v818_v59, %v294_v14  ;;  %v305_v21 = vmul.f32 0.5, %v304_v15  ;;  %v1179_v51 = vadd.f32 %v334_v43, %v328_v25  ;;  %v416_v13 = vadd.s32 47, %v403_v8 }
  0xd3   : > { %v318_v22 = vsub.f32 1.5, %v317_v18  ;;  %v410_v14 = vadd.s32 39, %v403_v8  ;;  %v404_v15 = vadd.s32 31, %v403_v8 }
  0xd4   : > { %v296_v29 = vmul.f32 %v295_v20, %v275_v49  ;;  %v306_v30 = vsub.f32 1.5, %v305_v21  ;;  %806 = vset.pattern.permute.xlu2 %v416_v13  ;;  %v391_v21 = vstv %s390_s22 }
  0xd5   : > { %v319_v33 = vmul.f32 %v820_v62, %v318_v22  ;;  %805 = vset.pattern.permute.xlu0 %v410_v14  ;;  %804 = vset.pattern.permute.xlu1 %v404_v15 }
  0xd6   : > { %v298_v38 = vsel %vm297_vm2, %v275_v49, %v296_v29  ;;  %v307_v40 = vmul.f32 %v822_v3, %v306_v30  ;;  %v380_v3 = vpop.permute.xlu2 %379  ;;  %v397_v29 = vstv %s717_s4 }
  0xd7   : > { %v301_v41 = vsel %vm299_vm3, %v300_v32, %v298_v38  ;;  %v320_v42 = vmul.f32 %v319_v33, %v277_v54  ;;  %v381_v5 = vsel %vm372_vm11, %v380_v3, %v1164_v27 }
  0xd8   : > { %v308_v44 = vmul.f32 %v307_v40, %v276_v56  ;;  %v335_v28 = vmul.f32 %v333_v23, %v301_v41  ;;  %382 = vrot.lane.b32.xlu1 %v381_v5, %s979_s23  ;;  %v449_v40 = vadd.s32 1, %v403_v8  ;;  %v461_v41 = vadd.s32 17, %v403_v8 }
  0xd9   : > { %v322_v47 = vsel %vm321_vm4, %v277_v54, %v320_v42  ;;  %v422_v42 = vadd.s32 55, %v403_v8 }
  0xda   : > { %v310_v37 = vsel %vm309_vm5, %v276_v56, %v308_v44  ;;  %v325_v48 = vsel %vm323_vm6, %v324_v45, %v322_v47  ;;  %v1177_v36 = vadd.f32 %v335_v28, %v329_v34  ;;  %v358_v56 = vperm.slane %v1179_v51, %v1164_v27 }
  0xdb   : > { %v313_v49 = vsel %vm311_vm7, %v312_v46, %v310_v37  ;;  %v337_v50 = vmul.f32 %v333_v23, %v325_v48  ;;  %v467_v28 = vadd.s32 25, %v403_v8  ;;  %v455_v46 = vadd.s32 9, %v403_v8 }
  0xdc   : > { %v336_v55 = vmul.f32 %v333_v23, %v313_v49  ;;  %v360_v54 = vperm.slane %v1177_v36, %v359_v35  ;;  %v1203_v23 = vstv %s716_s30  ;;  %v982_v49 = vmov 0  }
  0xdd   : > { %v1184_v58 = vadd.f32 %v337_v50, %v331_v31  ;;  %v346_v37 = vmul.f32 %v1203_v23, %v1179_v51 }
  0xde   : > { %v1187_v59 = vadd.f32 %v336_v55, %v330_v53  ;;  %v362_v39 = vsel %vm361_vm8, %v360_v54, %v358_v56  ;;  %v386_v18 = vpop.permute.xlu2 %385 }
  0xdf   : > { %v368_v60 = vperm.slane %v1184_v58, %v367_v52  ;;  %v349_v51 = vmul.f32 %v1203_v23, %v1184_v58 }
  0xe0   : > { %v364_v61 = vperm.slane %v1187_v59, %v363_v57  ;;  %v348_v54 = vmul.f32 %v1203_v23, %v1187_v59 }
  0xe2   : > { %v366_v62 = vsel %vm365_vm9, %v364_v61, %v362_v39 }
  0xe3   : > { %v370_v63 = vsel %vm369_vm10, %v368_v60, %v366_v62 }
  0xe4   : > { %373 = vrot.lane.b32.xlu0 %v370_v63, %s979_s23 }
  0xec   : > { %434 = vrot.lane.b32.xlu0 %v1164_v27, %s981_s28 }
 0x14a   : > { %v383_v16 = vpop.permute.xlu1 %382 }
 0x14b   : > { %v384_v17 = vsel %vm372_vm11, %v383_v16, %v1164_v27 }
 0x14c   : > { %v387_v19 = vsub.s32 %v384_v17, %v386_v18 }
 0x14e   : > { %v388_v20 = vadd.s32 1, %v387_v19 }
 0x150   : > { %vm389_vm12 = vcmp.eq.s32.totalorder %v388_v20, 0  ;;  %vm393_vm13 = vcmp.eq.s32.totalorder %v388_v20, 1  ;;  %vm395_vm14 = vcmp.eq.s32.totalorder %v388_v20, 2  ;;  %v347_v20 = vmul.f32 %v1203_v23, %v1177_v36 }
 0x151   : > { %v392_v22 = vsel %vm389_vm12, %v391_v21, 0.0 }
 0x152   : > { %v394_v26 = vsel %vm393_vm13, %v1203_v23, %v392_v22 }
 0x153   : > { %v398_v27 = vsel %vm395_vm14, %v397_v29, %v394_v26 }
 0x156   : > { %v374_v6 = vpop.permute.xlu0 %373 }
 0x157   : > { %v375_v7 = vsel %vm372_vm11, %v374_v6, %v370_v63 }
 0x158   : > { %376 = vrot.lane.b32.xlu2 %v375_v7, %s979_s23 }
 0x15e   : > { %v435_v24 = vpop.permute.xlu0 %434 }
 0x15f   : > { %v436_v25 = vsub.s32 %v384_v17, %v435_v24 }
 0x161   : > { %v437_v32 = vadd.s32 1, %v436_v25 }
 0x163   : > { %vm438_vm15 = vcmp.eq.s32.totalorder %v437_v32, 0  ;;  %vm440_vm0 = vcmp.eq.s32.totalorder %v437_v32, 1  ;;  %vm442_vm1 = vcmp.eq.s32.totalorder %v437_v32, 2 }
 0x164   : > { %v439_v38 = vsel %vm438_vm15, %v391_v21, 0.0 }
 0x165   : > { %v441_v43 = vsel %vm440_vm0, %v1203_v23, %v439_v38 }
 0x166   : > { %v443_v35 = vsel %vm442_vm1, %v397_v29, %v441_v43 }
 0x1b2   : > { %v377_v30 = vpop.permute.xlu2 %376 }
 0x1b3   : > { %v378_v31 = vsel %vm372_vm11, %v377_v30, %v370_v63 }
 0x1b4   : > { %v399_v33 = vmul.f32 %v398_v27, %v378_v31  ;;  %v444_v44 = vmul.f32 %v443_v35, %v378_v31 }
 0x1b6   : > { %v401_v34 = vperm.slane %v399_v33, 0  ;;  %v446_v45 = vperm.slane %v444_v44, 0 }
 0x1b8   : > { %418 = vperm.xlu2 %806, %v401_v34   ;;  %412 = vperm.xlu0 %805, %v401_v34  }
 0x1b9   : > { %406 = vperm.xlu1 %804, %v401_v34  }
 0x1c0   : > { %808 = vset.pattern.permute.xlu2 %v449_v40  ;;  %810 = vset.pattern.permute.xlu0 %v461_v41 }
 0x1c1   : > { %807 = vset.pattern.permute.xlu1 %v422_v42 }
 0x1c8   : > { %463 = vperm.xlu0 %810, %v446_v45   ;;  %451 = vperm.xlu2 %808, %v446_v45  }
 0x1c9   : > { %424 = vperm.xlu1 %807, %v401_v34  }
 0x1d0   : > { %811 = vset.pattern.permute.xlu2 %v467_v28  ;;  %814 = vset.pattern.permute.xlu0 %v982_v49 }
 0x1d1   : > { %809 = vset.pattern.permute.xlu1 %v455_v46 }
 0x1d8   : > { %469 = vperm.xlu2 %811, %v446_v45  }
 0x1d9   : > { %457 = vperm.xlu1 %809, %v446_v45  }
 0x1e0   : > { %813 = vset.pattern.permute.xlu2 %v982_v49 }
 0x1e1   : > { %812 = vset.pattern.permute.xlu1 %v982_v49 }
 0x212   : > { %v419_v47 = vpop.permute.xlu2 %418 }
 0x213   : > { %v432_v60 = vadd.f32 %v419_v47, %v348_v54 }
 0x222   : > { %v452_v52 = vpop.permute.xlu2 %451 }
 0x22a   : > { %v413_v57 = vpop.permute.xlu0 %412 }
 0x22b   : > { %v407_v48 = vpop.permute.xlu1 %406  ;;  %v431_v25 = vadd.f32 %v413_v57, %v347_v20 }
 0x22c   : > { %v430_v50 = vadd.f32 %v407_v48, %v346_v37 }
 0x22e   : > { %v475_v53 = vadd.f32 %v452_v52, %v430_v50 }
 0x230   : > { %v718_v55 = vmul.f32 -1.442695, %v475_v53 }
 0x232   : > { %823 = vpow2.f32 %v718_v55  ;;  %v470_v5 = vpop.permute.xlu2 %469 }
 0x238   : > { %v824_v56 = vpop.eup %823 }
 0x239   : > { %v491_v61 = vadd.f32 1.0, %v824_v56 }
 0x23a   : > { %v464_v39 = vpop.permute.xlu0 %463 }
 0x23b   : > { %825 = vrcp.f32 %v491_v61  ;;  %v425_v62 = vpop.permute.xlu1 %424  ;;  %v477_v63 = vadd.f32 %v464_v39, %v432_v60  ;;  %v506_v16 = vand.u32 2147483648, %v491_v61  ;;  %v504_v58 = vand.u32 2147483647, %v491_v61 }
 0x23c   : > { %v433_v3 = vadd.f32 %v425_v62, %v349_v51  ;;  %vm500_vm3 = vweird.f32 %v491_v61 }
 0x23d   : > { %v720_v6 = vmul.f32 -1.442695, %v477_v63  ;;  %v507_v24 = vor.u32 1.1754944e-38, %v506_v16  ;;  %vm505_vm5 = vcmp.eq.f32.partialorder %v504_v58, 8.507059e+37 }
 0x23e   : > { %v478_v7 = vadd.f32 %v470_v5, %v433_v3 }
 0x23f   : > { %827 = vpow2.f32 %v720_v6 }
 0x240   : > { %v721_v8 = vmul.f32 -1.442695, %v478_v7 }
 0x241   : > { %v826_v13 = vpop.eup %825 }
 0x242   : > { %829 = vpow2.f32 %v721_v8  ;;  %v496_v14 = vmul.f32 %v826_v13, %v491_v61  ;;  %vm501_vm2 = vweird.f32 %v826_v13 }
 0x243   : > { %vm502_vm4 = vmor %vm500_vm3, %vm501_vm2 }
 0x244   : > { %v497_v59 = vsub.f32 1.0, %v496_v14 }
 0x245   : > { %v828_v15 = vpop.eup %827 }
 0x246   : > { %v493_v17 = vadd.f32 1.0, %v828_v15  ;;  %v498_v18 = vmul.f32 %v826_v13, %v497_v59 }
 0x248   : > { %v830_v19 = vpop.eup %829  ;;  %831 = vrcp.f32 %v493_v17  ;;  %v499_v21 = vadd.f32 %v826_v13, %v498_v18  ;;  %v536_v23 = vand.u32 2147483648, %v493_v17  ;;  %v534_v41 = vand.u32 2147483647, %v493_v17 }
 0x249   : > { %v494_v22 = vadd.f32 1.0, %v830_v19  ;;  %vm530_vm7 = vweird.f32 %v493_v17 }
 0x24a   : > { %v503_v26 = vsel %vm502_vm4, %v826_v13, %v499_v21  ;;  %v537_v45 = vor.u32 1.1754944e-38, %v536_v23  ;;  %vm535_vm10 = vcmp.eq.f32.partialorder %v534_v41, 8.507059e+37 }
 0x24b   : > { %833 = vrcp.f32 %v494_v22  ;;  %v458_v29 = vpop.permute.xlu1 %457  ;;  %v508_v30 = vsel %vm505_vm5, %v507_v24, %v503_v26  ;;  %v551_v35 = vand.u32 2147483648, %v494_v22  ;;  %v549_v46 = vand.u32 2147483647, %v494_v22 }
 0x24c   : > { %v476_v27 = vadd.f32 %v458_v29, %v431_v25  ;;  %557 = vperm.xlu1 %812, %v508_v30   ;;  %vm545_vm11 = vweird.f32 %v494_v22 }
 0x24d   : > { %v552_v50 = vor.u32 1.1754944e-38, %v551_v35  ;;  %vm550_vm13 = vcmp.eq.f32.partialorder %v549_v46, 8.507059e+37 }
 0x24e   : > { %v832_v31 = vpop.eup %831  ;;  %v719_v32 = vmul.f32 -1.442695, %v476_v27 }
 0x24f   : > { %v526_v33 = vmul.f32 %v832_v31, %v493_v17  ;;  %vm531_vm6 = vweird.f32 %v832_v31 }
 0x250   : > { %835 = vpow2.f32 %v719_v32  ;;  %vm532_vm8 = vmor %vm530_vm7, %vm531_vm6 }
 0x251   : > { %v834_v34 = vpop.eup %833  ;;  %v527_v36 = vsub.f32 1.0, %v526_v33 }
 0x252   : > { %v541_v38 = vmul.f32 %v834_v34, %v494_v22  ;;  %vm546_vm9 = vweird.f32 %v834_v34 }
 0x253   : > { %v528_v40 = vmul.f32 %v832_v31, %v527_v36  ;;  %vm547_vm12 = vmor %vm545_vm11, %vm546_vm9 }
 0x254   : > { %v542_v42 = vsub.f32 1.0, %v541_v38 }
 0x255   : > { %v529_v43 = vadd.f32 %v832_v31, %v528_v40 }
 0x256   : > { %v836_v44 = vpop.eup %835  ;;  %v543_v28 = vmul.f32 %v834_v34, %v542_v42 }
 0x257   : > { %v492_v47 = vadd.f32 1.0, %v836_v44  ;;  %v533_v37 = vsel %vm532_vm8, %v832_v31, %v529_v43 }
 0x258   : > { %v538_v48 = vsel %vm535_vm10, %v537_v45, %v533_v37  ;;  %v544_v49 = vadd.f32 %v834_v34, %v543_v28 }
 0x259   : > { %837 = vrcp.f32 %v492_v47  ;;  %567 = vperm.xlu1 %812, %v538_v48   ;;  %v521_v56 = vand.u32 2147483648, %v492_v47  ;;  %v519_v61 = vand.u32 2147483647, %v492_v47  ;;  %vm515_vm15 = vweird.f32 %v492_v47 }
 0x25a   : > { %v548_v52 = vsel %vm547_vm12, %v834_v34, %v544_v49 }
 0x25b   : > { %v553_v53 = vsel %vm550_vm13, %v552_v50, %v548_v52  ;;  %v522_v39 = vor.u32 1.1754944e-38, %v521_v56  ;;  %vm520_vm1 = vcmp.eq.f32.partialorder %v519_v61, 8.507059e+37 }
 0x25c   : > { %572 = vperm.xlu0 %814, %v553_v53  }
 0x25f   : > { %v838_v55 = vpop.eup %837 }
 0x260   : > { %v511_v57 = vmul.f32 %v838_v55, %v492_v47  ;;  %vm516_vm14 = vweird.f32 %v838_v55 }
 0x261   : > { %vm517_vm0 = vmor %vm515_vm15, %vm516_vm14 }
 0x262   : > { %v512_v54 = vsub.f32 1.0, %v511_v57 }
 0x264   : > { %v513_v60 = vmul.f32 %v838_v55, %v512_v54 }
 0x266   : > { %v514_v51 = vadd.f32 %v838_v55, %v513_v60 }
 0x268   : > { %v518_v62 = vsel %vm517_vm0, %v838_v55, %v514_v51 }
 0x269   : > { %v523_v63 = vsel %vm520_vm1, %v522_v39, %v518_v62 }
 0x26a   : > { %562 = vperm.xlu2 %813, %v523_v63  }
 0x2be   : > { %v558_v3 = vpop.permute.xlu1 %557 }
 0x2bf   : > { %v575_v5 = vmul.f32 %v558_v3, %v1127_v2  ;;  %v576_v6 = vmul.f32 %v558_v3, %v1131_v4 }
 0x2c1   : > { %583 = vst [vmem:[%s217_s29] sm:$0xff] %v575_v5 }
 0x2c2   : > { %584 = vst [vmem:[%s217_s29 + $0x8] sm:$0xff] %v576_v6 }
 0x2c4   : > { %v563_v7 = vpop.permute.xlu2 %562 }
 0x2c5   : > { %v577_v8 = vmul.f32 %v563_v7, %v1143_v11  ;;  %v578_v13 = vmul.f32 %v563_v7, %v1145_v12 }
 0x2c7   : > { %585 = vst [vmem:[%s217_s29 + $0x10] sm:$0xff] %v577_v8 }
 0x2c8   : > { %586 = vst [vmem:[%s217_s29 + $0x18] sm:$0xff] %v578_v13 }
 0x2cb   : > { %v568_v2 = vpop.permute.xlu1 %567 }
 0x2cc   : > { %v579_v4 = vmul.f32 %v568_v2, %v1123_v0  ;;  %v580_v14 = vmul.f32 %v568_v2, %v1125_v1 }
 0x2ce   : > { %587 = vst [vmem:[%s217_s29 + $0x20] sm:$0xff] %v579_v4  ;;  %v573_v11 = vpop.permute.xlu0 %572 }
 0x2cf   : > { %588 = vst [vmem:[%s217_s29 + $0x28] sm:$0xff] %v580_v14  ;;  %v581_v12 = vmul.f32 %v573_v11, %v1139_v9  ;;  %v582_v59 = vmul.f32 %v573_v11, %v1141_v10 }
 0x2d1   : > { %589 = vst [vmem:[%s217_s29 + $0x30] sm:$0xff] %v581_v12 }
 0x2d2   : > { %590 = vst [vmem:[%s217_s29 + $0x38] sm:$0xff] %v582_v59 }
 0x2d3   : > { %926 = shalt.err (!%p923_p8)
}
 0x2d4   : > { %s983_s0 = smov 256   ;;  %s984_s28 = smov 16  }
 0x2d5   : > { %739 = dma.vmem_to_hbm [thread:$0]  (%p1057_p11), %s605_s8, 1024, %s607_s10, %s592_s16, %s983_s0, %s983_s0, %s984_s28  }
 0x2d6 PF: > { %s621_s22 = sand.u32 1, %s961_s12   ;;  %p1271_p9 = scmp.ge.s32.totalorder %s973_s15, 2 }
 0x2d7   : > { %s622_s30 = scalar_lea.sflag [#allocation4], %s621_s22 }
 0x2d8   : > { %p753_p10 = pnand %p1271_p9, %p1061_p12 }
 0x2da   : > { %p754_p1 = pneg %p753_p10 }
 0x2dc   : > { %956 = dma.done.wait (%p754_p1), %s622_s30, 1024  }
 0x2dd   : > { %958 = vsyncadd (%p754_p1), %s622_s30, 4294966272  ;;  %p18_p2 = scmp.ge.s32.totalorder %s1030_s18, 4   ;;  %s1272_s12 = smov %s965_s13 }
 0x2de   : > { %s1273_s13 = smov %s969_s14  ;;  %s1274_s14 = smov %s1042_s21 }
 0x2df   : > { %s1275_s15 = smov %s1030_s18  ;;  %20 = sbr.rel (!%p18_p2) target bundleno = 9 (0x9), region = 86 }
 0x2e4   :  { %628 = vsyncpa [#allocation3], 1 }
 0x2e5   :  { %630 = vsyncpa [#allocation3 + $0x1], 1 }
 0x2e6   :  { %631 = vsyncpa [#allocation4], 1 }
 0x2e7   :  { %633 = vsyncpa [#allocation4 + $0x1], 1 }
 0x2e8   :  { %634 = vsyncpa [#allocation5], 1 }
 0x2e9   :  { %636 = vsyncpa [#allocation5 + $0x1], 1 }
 0x2ea   :  { %637 = vsyncpa [#allocation7], 1 }

</bundles_post_ra>
